<compile_context>
chip_gen: v7x
topology: tpu7x:2x2x1
jax: 0.10.0
libtpu: 0.0.40
codegen_flags: <defaults>
</compile_context>

<pallas_src>
import jax
import jax.numpy as jnp
from jax import lax
from jax.experimental import pallas as pl
from jax.experimental.pallas import tpu as pltpu


def _round_up(x: int, m: int) -> int:
    return ((x + m - 1) // m) * m


def _bigram_embed_kernel(idx_ref, table_ref, out_ref):
    # idx_ref:   (TILE, 1)      int32   -- token ids for this row tile
    # table_ref: (V, V_pad)     float32 -- full embedding table, resident in VMEM
    # out_ref:   (TILE, V_pad)  out_dtype -- gathered logits for this tile
    tile = idx_ref.shape[0]
    v = table_ref.shape[0]
    # In-kernel clamp (PyTorch would raise on OOB; we clamp). Cheap VPU work
    # hidden under the DMA-bound step -- no separate wrapper-side XLA pass.
    ids = jnp.clip(idx_ref[...], 0, v - 1)                    # (TILE, 1) int32
    cols = lax.broadcasted_iota(jnp.int32, (tile, v), 1)      # (TILE, V)
    one_hot = (ids == cols).astype(table_ref.dtype)           # (TILE, V)
    # Embedding lookup == one_hot @ table (MXU). Precision pinned so the f32
    # table rows are reproduced (not silently bf16-rounded by the default
    # MXU precision); f32 accumulation.
    gathered = jnp.dot(
        one_hot,
        table_ref[...],
        precision=lax.Precision.HIGHEST,
        preferred_element_type=jnp.float32,
    )
    out_ref[...] = gathered.astype(out_ref.dtype)


def bigram_forward(idx, table, targets=None, *, row_tile=2048,
                   out_dtype=jnp.float32):
    """idx: (B, T) ints, table: (V, V) float32 -> logits (B, T, V) out_dtype.

    `targets` is accepted (to mirror forward(idx, targets)) but unused — the
    reference forward() returns only the logits.
    """
    del targets  # unused by the PyTorch forward as well
    B, T = idx.shape
    V = table.shape[0]
    N = B * T

    # Lane-dense output: pad the vocab (last) dim up to a multiple of 128 so
    # the output writeback uses unmasked vst (pad cols sliced off afterwards).
    V_pad = _round_up(V, 128)
    if V_pad != V:
        table = jnp.pad(table, ((0, 0), (0, V_pad - V)))

    # Effective row tile: never larger than the (sublane-rounded) problem size,
    # so tiny problems (the demo, B*T = 16) run as a single grid step.
    tile = min(row_tile, _round_up(N, 8))
    # v7x has 2 TensorCores; the "parallel" grid axis only shards with >= 2
    # blocks. For problems big enough that per-step overhead is amortized,
    # cap the tile so at least 2 blocks exist. (No-op for N > row_tile; harmless
    # on single-TC v5e/v6e.)
    if N >= 1024 and tile >= _round_up(N, 8):
        tile = max(8, _round_up(pl.cdiv(N, 2), 8))
    n_blocks = pl.cdiv(N, tile)
    N_pad = n_blocks * tile

    # Pad the tail (no divisibility assert needed); pad ids are 0 and their
    # gathered rows are sliced off below. Clamp happens inside the kernel.
    ids = idx.reshape(N).astype(jnp.int32)
    if N_pad != N:
        ids = jnp.pad(ids, (0, N_pad - N))
    ids = ids.reshape(N_pad, 1)

    out_itemsize = jnp.dtype(out_dtype).itemsize
    # VMEM budget: whole table (single-buffered) + double-buffered output
    # blocks + double-buffered id blocks (a last-dim-of-1 block is stored
    # lane-padded, i.e. tile*128*4 bytes per buffer, not tile*4).
    table_bytes = V * V_pad * 4
    out_buf_bytes = 2 * tile * V_pad * out_itemsize
    id_buf_bytes = 2 * tile * 128 * 4
    needed = table_bytes + out_buf_bytes + id_buf_bytes
    # Raise past v5e's 16 MiB scoped default when needed; cap at 64 MiB so we
    # never exceed v7x's physical per-TC VMEM.
    # TODO(synk): for very large V (table no longer VMEM-resident on v7x),
    # add a K-tiled "arbitrary" grid axis with an f32 accumulator instead.
    vmem_limit = int(min(max(needed + (4 << 20), 16 << 20), 64 << 20))

    cost = pl.CostEstimate(
        flops=2 * N_pad * V * V_pad,
        bytes_accessed=N_pad * V_pad * out_itemsize + table_bytes + N_pad * 4,
        transcendentals=0,
    )

    out_flat = pl.pallas_call(
        _bigram_embed_kernel,
        out_shape=jax.ShapeDtypeStruct((N_pad, V_pad), out_dtype),
        grid_spec=pltpu.PrefetchScalarGridSpec(
            num_scalar_prefetch=0,
            grid=(n_blocks,),
            in_specs=[
                # Token-id rows: blocked & pipelined over the row grid.
                pl.BlockSpec((tile, 1), lambda i: (i, 0)),
                # Whole table resident in VMEM once (grid-invariant, so no
                # double-buffering / per-step DMA).
                pl.BlockSpec(memory_space=pltpu.MemorySpace.VMEM),
            ],
            out_specs=pl.BlockSpec((tile, V_pad), lambda i: (i, 0)),
        ),
        compiler_params=pltpu.CompilerParams(
            # Independent row blocks: shards across both TensorCores on v7x.
            dimension_semantics=("parallel",),
            vmem_limit_bytes=vmem_limit,
        ),
        cost_estimate=cost,
    )(ids, table)

    return out_flat[:N, :V].reshape(B, T, V)


if __name__ == "__main__":
    # Small, deterministic setup consistent with the module:
    #   vocab_size V, batch B, sequence length T
    V = 128      # lane-aligned vocab size
    B = 2
    T = 8

    key = jax.random.PRNGKey(0)
    k_table, k_idx, k_tgt = jax.random.split(key, 3)

    # nn.Embedding(V, V) weight (N(0,1), like torch default init).
    table = jax.random.normal(k_table, (V, V), dtype=jnp.float32)

    idx = jax.random.randint(k_idx, (B, T), 0, V, dtype=jnp.int32)
    targets = jax.random.randint(k_tgt, (B, T), 0, V, dtype=jnp.int32)  # unused by forward

    logits = bigram_forward(idx, table, targets)
    logits = jax.block_until_ready(logits)

    # Cross-check against plain-JAX embedding gather.
    ref = table[idx]  # (B, T, V)
    assert logits.shape == (B, T, V), logits.shape
    assert jnp.allclose(logits, ref, atol=1e-5, rtol=1e-5), "mismatch vs reference gather"

    print("KERNEL_OK")
</pallas_src>

<mosaic_0001>
module attributes {stable_mosaic.version = 11 : i64} {
  func.func @_bigram_embed_kernel(%arg0: i32, %arg1: memref<16x1xi32, #tpu.memory_space<vmem>>, %arg2: memref<128x128xf32, #tpu.memory_space<vmem>>, %arg3: memref<16x128xf32, #tpu.memory_space<vmem>>) attributes {dimension_semantics = [#tpu.dimension_semantics<parallel>], iteration_bounds = array<i64: 1>, scalar_prefetch = 0 : i64, scratch_operands = 0 : i64, tpu.core_type = #tpu.core_type<tc>, window_params = [{transform_indices = @transform_0, window_bounds = array<i64: 16, 1>}, {pipeline_mode = #tpu.pipeline_mode<synchronous>, transform_indices = @transform_1, window_bounds = array<i64: 128, 128>}, {transform_indices = @transform_2, window_bounds = array<i64: 16, 128>}]} {
    %c0 = arith.constant 0 : index
    %c0_0 = arith.constant 0 : index
    %0 = vector.load %arg1[%c0, %c0_0] : memref<16x1xi32, #tpu.memory_space<vmem>>, vector<16x1xi32>
    %c0_i32 = arith.constant 0 : i32
    %c127_i32 = arith.constant 127 : i32
    %1 = vector.broadcast %c0_i32 : i32 to vector<16x1xi32>
    %2 = arith.maxsi %1, %0 : vector<16x1xi32>
    %3 = vector.broadcast %c127_i32 : i32 to vector<16x1xi32>
    %4 = arith.minsi %3, %2 : vector<16x1xi32>
    %5 = tpu.iota {dimensions = array<i32: 1>} : vector<16x128xi32>
    %6 = vector.broadcast %4 : vector<16x1xi32> to vector<16x128xi32>
    %7 = arith.cmpi eq, %6, %5 : vector<16x128xi32>
    %8 = arith.extui %7 : vector<16x128xi1> to vector<16x128xi32>
    %9 = arith.sitofp %8 : vector<16x128xi32> to vector<16x128xf32>
    %c0_1 = arith.constant 0 : index
    %c0_2 = arith.constant 0 : index
    %10 = vector.load %arg2[%c0_1, %c0_2] : memref<128x128xf32, #tpu.memory_space<vmem>>, vector<128x128xf32>
    %cst = arith.constant dense<0.000000e+00> : vector<16x128xf32>
    %11 = tpu.matmul %9, %10, %cst {dimension_numbers = #tpu.dot_dimension_numbers<[1], [0], [0], [1], [0, 0, 1, 1], [], []>, precision = #tpu.contract_precision<fp32>} : vector<16x128xf32>, vector<128x128xf32>, vector<16x128xf32> -> vector<16x128xf32>
    %c0_3 = arith.constant 0 : index
    %c0_4 = arith.constant 0 : index
    %12 = vector.load %arg3[%c0_3, %c0_4] : memref<16x128xf32, #tpu.memory_space<vmem>>, vector<16x128xf32>
    tpu.vector_store %arg3[%c0_3, %c0_4], %11 {strides = array<i32>} : memref<16x128xf32, #tpu.memory_space<vmem>>, vector<16x128xf32>,
    return
  }
  func.func @transform_0(%arg0: i32) -> (i32, i32) {
    %c0_i32 = arith.constant 0 : i32
    %c0_i32_0 = arith.constant 0 : i32
    return %arg0, %c0_i32 : i32, i32
  }
  func.func @transform_1(%arg0: i32) -> (i32, i32) {
    %c0_i32 = arith.constant 0 : i32
    %c0_i32_0 = arith.constant 0 : i32
    %c0_i32_1 = arith.constant 0 : i32
    return %c0_i32, %c0_i32_0 : i32, i32
  }
  func.func @transform_2(%arg0: i32) -> (i32, i32) {
    %c0_i32 = arith.constant 0 : i32
    %c0_i32_0 = arith.constant 0 : i32
    return %arg0, %c0_i32 : i32, i32
  }
}

</mosaic_0001>

<bundles_post_ra>
// kernel: tpu_custom_call.1
= control target key start
LH: loop header
LB: loop body
LE: loop exit
PB: predicated region body
PF: predicated region fallthrough
CT: control target
= control target key end

     0   :  { %7 = vsyncpa [#allocation3], 0  ;;  %s1711_s0 = inlined_call_operand.vmem [shape: s32[16,1], index: 0, kind: input, shape index: {}]   ;;  %s1712_s1 = inlined_call_operand.hbm [shape: f32[128,128], index: 1, kind: input, shape index: {}]   ;;  %s1713_s2 = inlined_call_operand.hbm [shape: f32[16,128], index: 2, kind: output, shape index: {}]  }
   0x1   :  { %8 = vsyncpa [#allocation4], 0  ;;  %s1353_s9 = smov [#allocation2]   ;;  %s1305_s13 = scalar_lea.hbm %s1712_s1, 2048 }
   0x2   :  { %s16_s10 = sshll.u32 %s1353_s9, 4  ;;  %p1306_p0 = scmp.ne.s32.totalorder %s1712_s1, %s1305_s13  ;;  %s17_s10 = int_to_ptr.vmem [resolvable:$true] %s16_s10 }
   0x3   :  { %p1309_p1 = scmp.lt.u32.totalorder %s1305_s13, %s1712_s1 }
   0x5   :  { %p1311_p2 = pnand %p1309_p1, %p1306_p0 }
   0x7   :  { %1314 = shalt.err (!%p1311_p2)
}
   0x8   :  { %s1315_s18 = scalar_lea.vmem %s17_s10, 2048  ;;  %p1320_p4 = scmp.lt.s32.totalorder %s17_s10, %s17_s10 }
   0x9   :  { %p1316_p3 = scmp.ne.s32.totalorder %s17_s10, %s1315_s18  ;;  %p1321_p5 = scmp.lt.s32.totalorder %s1315_s18, %s1315_s18 }
   0xb   :  { %p1322_p6 = por %p1321_p5, %p1320_p4 }
   0xd   :  { %p1323_p7 = pnand %p1322_p6, %p1316_p3 }
   0xf   :  { %1326 = shalt.err (!%p1323_p7)
}
  0x10   :  { %s1354_s19 = smov 128   ;;  %s1355_s20 = smov 8  }
  0x11   :  { %22 = dma.hbm_to_vmem [thread:$0]  %s1712_s1, 2048, %s17_s10, [#allocation3], %s1354_s19, %s1354_s19, %s1355_s20  }
  0x12   :  { %1349 = dma.done.wait [#allocation3], 2048  }
  0x13   :  { %1350 = vsyncadd [#allocation3], 4294965248  ;;  %v1356_v0 = vmov 0   ;;  %v26_v1 = vld [vmem:[%s1711_s0] sm:$0xff]  ;;  %v27_v2 = vld [vmem:[%s1711_s0 + $0x8] sm:$0xff]  ;;  %s1359_s0 = smov [#allocation5]  }
  0x14   :  { %1304 = vset.pattern.permute.xlu0 %v1356_v0  ;;  %v50_v3 = vld [vmem:[#allocation2] sm:$0xff]  ;;  %vm28_vm0 = vcmp.gt.s32.totalorder %v26_v1, 0  ;;  %vm30_vm1 = vcmp.gt.s32.totalorder %v27_v2, 0  ;;  %v51_v4 = vld [vmem:[#allocation2 + $0x8] sm:$0xff]  ;;  %v52_v6 = vld [vmem:[#allocation2 + $0x10] sm:$0xff]  ;;  %s757_s1 = sshll.u32 %s1359_s0, 4  ;;  %s758_s1 = int_to_ptr.vmem [resolvable:$true] %s757_s1 }
  0x15   :  { %v67_v5 = vand.u32 4294901760, %v50_v3  ;;  %v53_v7 = vld [vmem:[#allocation2 + $0x18] sm:$0xff]  ;;  %v29_v8 = vsel %vm28_vm0, %v26_v1, 0  ;;  %v31_v9 = vsel %vm30_vm1, %v27_v2, 0  ;;  %v70_v10 = vand.u32 4294901760, %v51_v4  ;;  %v54_v12 = vld [vmem:[#allocation2 + $0x20] sm:$0xff]  ;;  %p1332_p9 = scmp.lt.s32.totalorder %s758_s1, %s758_s1 }
  0x16   :  { %v73_v11 = vand.u32 4294901760, %v52_v6  ;;  %v55_v13 = vld [vmem:[#allocation2 + $0x28] sm:$0xff]  ;;  %vm32_vm2 = vcmp.lt.s32.totalorder %v29_v8, 127  ;;  %vm34_vm3 = vcmp.lt.s32.totalorder %v31_v9, 127  ;;  %v76_v14 = vand.u32 4294901760, %v53_v7  ;;  %v56_v20 = vld [vmem:[#allocation2 + $0x30] sm:$0xff] }
  0x17   :  { %v33_v15 = vsel %vm32_vm2, %v29_v8, 127  ;;  %v1396_v16 = vpack.c.bf16 %v70_v10, %v67_v5  ;;  %v79_v17 = vand.u32 4294901760, %v54_v12  ;;  %v82_v18 = vand.u32 4294901760, %v55_v13  ;;  %v1400_v21 = vld [vmem:[#allocation2 + $0x38] sm:$0xff]  ;;  %v1411_v26 = vld [vmem:[#allocation2 + $0x40] sm:$0xff]  ;;  %v1413_v27 = vld [vmem:[#allocation2 + $0x48] sm:$0xff] }
  0x18   :  { %39 = vperm.xlu0 %1304, %v33_v15   ;;  %v1398_v19 = vpack.c.bf16 %v76_v14, %v73_v11  ;;  %v35_v22 = vsel %vm34_vm3, %v31_v9, 127  ;;  %v85_v24 = vand.u32 4294901760, %v56_v20  ;;  %v88_v25 = vand.u32 4294901760, %v1400_v21  ;;  %v1423_v31 = vld [vmem:[#allocation2 + $0x50] sm:$0xff]  ;;  %v1425_v32 = vld [vmem:[#allocation2 + $0x58] sm:$0xff]  ;;  %v1435_v37 = vld [vmem:[#allocation2 + $0x60] sm:$0xff] }
  0x19   :  { %1192 = vmatprep.subr.bf16.mxu0 %v1396_v16  ;;  %1096 = vmatprep.subr.bf16.mxu1 %v1396_v16  ;;  %v1408_v23 = vpack.c.bf16 %v82_v18, %v79_v17  ;;  %v91_v29 = vand.u32 4294901760, %v1411_v26  ;;  %v94_v30 = vand.u32 4294901760, %v1413_v27  ;;  %v1427_v33 = vsub.f32 %v52_v6, %v73_v11  ;;  %v1442_v40 = vld [vmem:[#allocation2 + $0x68] sm:$0xff]  ;;  %v1461_v51 = vld [vmem:[#allocation2 + $0x70] sm:$0xff]  ;;  %v1473_v56 = vld [vmem:[#allocation2 + $0x78] sm:$0xff]  ;;  %s1327_s27 = scalar_lea.vmem %s758_s1, 256 }
  0x1a   :  { %1194 = vmatpush3.bf16.msra.mxu0 %v1396_v16  ;;  %1098 = vmatpush3.bf16.msra.mxu1 %v1396_v16  ;;  %v1419_v28 = vpack.c.bf16 %v88_v25, %v85_v24  ;;  %v1429_v34 = vsub.f32 %v53_v7, %v76_v14  ;;  %v97_v35 = vand.u32 4294901760, %v1423_v31  ;;  %v100_v36 = vand.u32 4294901760, %v1425_v32  ;;  %p1328_p8 = scmp.ne.s32.totalorder %s758_s1, %s1327_s27  ;;  %p1333_p10 = scmp.lt.s32.totalorder %s1327_s27, %s1327_s27 }
  0x1b   :  { %1196 = vmatprep.subr.bf16.mxu0 %v1398_v19  ;;  %1100 = vmatprep.subr.bf16.mxu1 %v1398_v19  ;;  %v184_v38 = vand.u32 4294901760, %v1427_v33  ;;  %v1440_v39 = vpack.c.bf16 %v94_v30, %v91_v29  ;;  %v1444_v41 = vsub.f32 %v50_v3, %v67_v5  ;;  %v1446_v42 = vsub.f32 %v51_v4, %v70_v10 }
  0x1c   :  { %42 = vperm.xlu0 %1304, %v35_v22   ;;  %v191_v43 = vand.u32 4294901760, %v1429_v34  ;;  %v1450_v45 = vsub.f32 %v54_v12, %v79_v17  ;;  %v1452_v46 = vsub.f32 %v55_v13, %v82_v18  ;;  %v103_v47 = vand.u32 4294901760, %v1435_v37  ;;  %p1334_p11 = por %p1333_p10, %p1332_p9 }
  0x1d   :  { %v185_v44 = vsub.f32 %v1427_v33, %v184_v38  ;;  %v106_v50 = vand.u32 4294901760, %v1442_v40  ;;  %v1471_v55 = vpack.c.bf16 %v100_v36, %v97_v35  ;;  %v170_v57 = vand.u32 4294901760, %v1444_v41 }
  0x1e   :  { %1198 = vmatpush3.bf16.msra.mxu0 %v1398_v19  ;;  %1102 = vmatpush3.bf16.msra.mxu1 %v1398_v19  ;;  %v1455_v48 = vpack.c.bf16 %v191_v43, %v184_v38  ;;  %v192_v49 = vsub.f32 %v1429_v34, %v191_v43  ;;  %v198_v53 = vand.u32 4294901760, %v1450_v45  ;;  %v205_v54 = vand.u32 4294901760, %v1452_v46  ;;  %p1335_p12 = pnand %p1334_p11, %p1328_p8 }
  0x1f   :  { %1200 = vmatprep.subr.bf16.mxu0 %v1408_v23  ;;  %1104 = vmatprep.subr.bf16.mxu1 %v1408_v23  ;;  %v186_v52 = vand.u32 4294901760, %v185_v44  ;;  %v177_v58 = vand.u32 4294901760, %v1446_v42  ;;  %v1481_v63 = vsub.f32 %v56_v20, %v85_v24  ;;  %v109_v0 = vand.u32 4294901760, %v1461_v51 }
  0x20   :  { %v193_v59 = vand.u32 4294901760, %v192_v49  ;;  %v1477_v60 = vpack.c.bf16 %v205_v54, %v198_v53  ;;  %v199_v61 = vsub.f32 %v1450_v45, %v198_v53  ;;  %v206_v62 = vsub.f32 %v1452_v46, %v205_v54 }
  0x21   :  { %v1487_v2 = vsub.f32 %v1400_v21, %v88_v25  ;;  %v112_v3 = vand.u32 4294901760, %v1473_v56  ;;  %v212_v6 = vand.u32 4294901760, %v1481_v63  ;;  %v1499_v7 = vpack.c.bf16 %v106_v50, %v103_v47 }
  0x22   :  { %1202 = vmatpush3.bf16.msra.mxu0 %v1408_v23  ;;  %1106 = vmatpush3.bf16.msra.mxu1 %v1408_v23  ;;  %v1484_v1 = vpack.c.bf16 %v193_v59, %v186_v52  ;;  %v200_v4 = vand.u32 4294901760, %v199_v61  ;;  %v207_v5 = vand.u32 4294901760, %v206_v62  ;;  %v171_v8 = vsub.f32 %v1444_v41, %v170_v57 }
  0x23   :  { %1204 = vmatprep.subr.bf16.mxu0 %v1419_v28  ;;  %1108 = vmatprep.subr.bf16.mxu1 %v1419_v28  ;;  %v178_v9 = vsub.f32 %v1446_v42, %v177_v58  ;;  %v219_v10 = vand.u32 4294901760, %v1487_v2  ;;  %v213_v12 = vsub.f32 %v1481_v63, %v212_v6  ;;  %v1508_v13 = vsub.f32 %v1411_v26, %v91_v29 }
  0x24   :  { %v1504_v11 = vpack.c.bf16 %v207_v5, %v200_v4  ;;  %v1511_v14 = vsub.f32 %v1413_v27, %v94_v30  ;;  %v1524_v22 = vpack.c.bf16 %v112_v3, %v109_v0  ;;  %v172_v24 = vand.u32 4294901760, %v171_v8 }
  0x25   :  { %v1513_v15 = vpack.c.bf16 %v219_v10, %v212_v6  ;;  %v220_v17 = vsub.f32 %v1487_v2, %v219_v10  ;;  %v214_v18 = vand.u32 4294901760, %v213_v12  ;;  %v226_v20 = vand.u32 4294901760, %v1508_v13 }
  0x26   :  { %1206 = vmatpush3.bf16.msra.mxu0 %v1419_v28  ;;  %1110 = vmatpush3.bf16.msra.mxu1 %v1419_v28  ;;  %v233_v21 = vand.u32 4294901760, %v1511_v14  ;;  %v179_v25 = vand.u32 4294901760, %v178_v9  ;;  %v239_v38 = vsub.f32 %v1423_v31, %v97_v35  ;;  %v246_v44 = vsub.f32 %v1425_v32, %v100_v36 }
  0x27   :  { %1208 = vmatprep.subr.bf16.mxu0 %v1440_v39  ;;  %1112 = vmatprep.subr.bf16.mxu1 %v1440_v39  ;;  %v221_v26 = vand.u32 4294901760, %v220_v17  ;;  %v227_v29 = vsub.f32 %v1508_v13, %v226_v20  ;;  %v1223_v54 = vpack.c.bf16 %v177_v58, %v170_v57  ;;  %v253_v32 = vsub.f32 %v1435_v37, %v103_v47 }
  0x28   :  { %v1526_v27 = vpack.c.bf16 %v233_v21, %v226_v20  ;;  %v234_v30 = vsub.f32 %v1511_v14, %v233_v21  ;;  %v240_v53 = vand.u32 4294901760, %v239_v38  ;;  %v1542_v59 = vpack.c.bf16 %v179_v25, %v172_v24 }
  0x29   :  { %v1533_v43 = vpack.c.bf16 %v221_v26, %v214_v18  ;;  %v228_v49 = vand.u32 4294901760, %v227_v29  ;;  %v247_v31 = vand.u32 4294901760, %v246_v44  ;;  %v260_v36 = vsub.f32 %v1442_v40, %v106_v50 }
  0x2a   :  { %1210 = vmatpush3.bf16.msra.mxu0 %v1440_v39  ;;  %1114 = vmatpush3.bf16.msra.mxu1 %v1440_v39  ;;  %v235_v52 = vand.u32 4294901760, %v234_v30  ;;  %v241_v61 = vsub.f32 %v239_v38, %v240_v53  ;;  %v254_v58 = vand.u32 4294901760, %v253_v32  ;;  %v267_v40 = vsub.f32 %v1461_v51, %v109_v0 }
  0x2b   :  { %1212 = vmatprep.subr.bf16.mxu0 %v1471_v55  ;;  %1116 = vmatprep.subr.bf16.mxu1 %v1471_v55  ;;  %v1552_v62 = vpack.c.bf16 %v247_v31, %v240_v53  ;;  %v248_v4 = vsub.f32 %v246_v44, %v247_v31  ;;  %v261_v5 = vand.u32 4294901760, %v260_v36  ;;  %v274_v9 = vsub.f32 %v1473_v56, %v112_v3 }
  0x2c   :  { %v1544_v35 = vpack.c.bf16 %v235_v52, %v228_v49  ;;  %v242_v57 = vand.u32 4294901760, %v241_v61  ;;  %v255_v37 = vsub.f32 %v253_v32, %v254_v58  ;;  %v268_v17 = vand.u32 4294901760, %v267_v40 }
  0x2d   :  { %v249_v6 = vand.u32 4294901760, %v248_v4  ;;  %v1557_v8 = vpack.c.bf16 %v261_v5, %v254_v58  ;;  %v262_v47 = vsub.f32 %v260_v36, %v261_v5  ;;  %v275_v18 = vand.u32 4294901760, %v274_v9 }
  0x2e   :  { %1214 = vmatpush3.bf16.msra.mxu0 %v1471_v55  ;;  %1118 = vmatpush3.bf16.msra.mxu1 %v1471_v55  ;;  %v256_v10 = vand.u32 4294901760, %v255_v37  ;;  %v269_v21 = vsub.f32 %v267_v40, %v268_v17  ;;  %v1573_v51 = vpack.c.bf16 %v1446_v42, %v1444_v41  ;;  %v1577_v56 = vpack.c.bf16 %v1429_v34, %v1427_v33 }
  0x2f   :  { %1216 = vmatprep.subr.bf16.mxu0 %v1499_v7  ;;  %1120 = vmatprep.subr.bf16.mxu1 %v1499_v7  ;;  %v1562_v50 = vpack.c.bf16 %v249_v6, %v242_v57  ;;  %v263_v12 = vand.u32 4294901760, %v262_v47  ;;  %v1567_v24 = vpack.c.bf16 %v275_v18, %v268_v17  ;;  %v276_v25 = vsub.f32 %v274_v9, %v275_v18 }
  0x30   :  { %v270_v26 = vand.u32 4294901760, %v269_v21  ;;  %v1581_v0 = vpack.c.bf16 %v1452_v46, %v1450_v45  ;;  %v1585_v3 = vpack.c.bf16 %v1487_v2, %v1481_v63  ;;  %v1589_v49 = vpack.c.bf16 %v1511_v14, %v1508_v13 }
  0x31   :  { %v1565_v20 = vpack.c.bf16 %v263_v12, %v256_v10  ;;  %v277_v29 = vand.u32 4294901760, %v276_v25  ;;  %v1591_v52 = vpack.c.bf16 %v246_v44, %v239_v38  ;;  %v1593_v41 = vpack.c.bf16 %v260_v36, %v253_v32 }
  0x32   :  { %1218 = vmatpush3.bf16.msra.mxu0 %v1499_v7  ;;  %1122 = vmatpush3.bf16.msra.mxu1 %v1499_v7  ;;  %v1595_v42 = vpack.c.bf16 %v274_v9, %v267_v40  ;;  %v36_v33 = vlaneseq  ;;  %v1357_v45 = vmov 0.0   ;;  %v1358_v36 = vmov 1.0  }
  0x33   :  { %1220 = vmatprep.subr.bf16.mxu0 %v1524_v22  ;;  %1124 = vmatprep.subr.bf16.mxu1 %v1524_v22  ;;  %v1569_v30 = vpack.c.bf16 %v277_v29, %v270_v26 }
  0x34   :  { %v1597_v34 = vand.u32 127, %v36_v33 }
  0x36   :  { %1222 = vmatpush3.bf16.msra.mxu0 %v1524_v22  ;;  %1126 = vmatpush3.bf16.msra.mxu1 %v1524_v22 }
  0x37   :  { %1224 = vmatprep.subr.bf16.mxu0 %v1223_v54  ;;  %1128 = vmatprep.subr.bf16.mxu1 %v1542_v59 }
  0x97   :  { %v40_v53 = vpop.permute.xlu0 %39 }
  0x98   :  { %vm44_vm4 = vcmp.eq.s32.totalorder %v40_v53, %v1597_v34 }
  0x99   :  { %v769_v46 = vsel %vm44_vm4, 1.0, %v1357_v45 }
  0x9a   :  { %v148_v63 = vsub.f32 %v769_v46, %v769_v46 }
  0x9b   :  { %v1602_v2 = vpop.permute.xlu0 %42 }
  0x9c   :  { %vm45_vm5 = vcmp.eq.s32.totalorder %v1602_v2, %v1597_v34  ;;  %v149_v13 = vand.u32 4294901760, %v148_v63 }
  0x9d   :  { %v770_v14 = vsel %vm45_vm5, 1.0, %v1357_v45 }
  0x9e   :  { %v1609_v38 = vsub.f32 %v770_v14, %v770_v14  ;;  %1022 = vmatprep.mubr.f32.mxu0 %v149_v13  ;;  %v150_v44 = vsub.f32 %v148_v63, %v149_v13 }
  0xa0   :  { %v151_v31 = vand.u32 4294901760, %v150_v44  ;;  %v159_v61 = vand.u32 4294901760, %v1609_v38 }
  0xa2   :  { %917 = vmatprep.mubr.f32.mxu1 %v151_v31  ;;  %1023 = vmatmul.mubr.f32.vlgmr.msra.gmra.mrb[0].mxu0 %v159_v61  ;;  %v160_v32 = vsub.f32 %v1609_v38, %v159_v61 }
  0xa3   :  { %1226 = vmatpush3.bf16.msra.mxu0 %v1223_v54  ;;  %1057 = vmatprep.mubr.msk.f32.mxu0 %vm44_vm4, %v1358_v36 }
  0xa4   :  { %1228 = vmatprep.subr.bf16.mxu0 %v1455_v48  ;;  %v161_v4 = vand.u32 4294901760, %v160_v32 }
  0xa6   :  { %918 = vmatmul.mubr.f32.vlgmr.msra.gmra.mrb[0].mxu1 %v161_v4 }
  0xa7   :  { %1130 = vmatpush3.bf16.msra.mxu1 %v1542_v59  ;;  %1230 = vmatpush3.bf16.msra.mxu0 %v1455_v48 }
  0xa8   :  { %952 = vmatprep.mubr.msk.f32.mxu1 %vm44_vm4, %v1358_v36  ;;  %1132 = vmatprep.subr.bf16.mxu1 %v1484_v1 }
  0xa9   :  { %1232 = vmatprep.subr.bf16.mxu0 %v1477_v60 }
  0xab   :  { %1134 = vmatpush3.bf16.msra.mxu1 %v1484_v1  ;;  %1234 = vmatpush3.bf16.msra.mxu0 %v1477_v60 }
  0xac   :  { %1136 = vmatprep.subr.bf16.mxu1 %v1504_v11  ;;  %1236 = vmatprep.subr.bf16.mxu0 %v1513_v15 }
  0xaf   :  { %1138 = vmatpush3.bf16.msra.mxu1 %v1504_v11  ;;  %1238 = vmatpush3.bf16.msra.mxu0 %v1513_v15 }
  0xb0   :  { %1140 = vmatprep.subr.bf16.mxu1 %v1533_v43  ;;  %1240 = vmatprep.subr.bf16.mxu0 %v1526_v27 }
  0xb3   :  { %1142 = vmatpush3.bf16.msra.mxu1 %v1533_v43  ;;  %1242 = vmatpush3.bf16.msra.mxu0 %v1526_v27 }
  0xb4   :  { %1144 = vmatprep.subr.bf16.mxu1 %v1544_v35  ;;  %1244 = vmatprep.subr.bf16.mxu0 %v1552_v62 }
  0xb7   :  { %1146 = vmatpush3.bf16.msra.mxu1 %v1544_v35  ;;  %1246 = vmatpush3.bf16.msra.mxu0 %v1552_v62 }
  0xb8   :  { %1148 = vmatprep.subr.bf16.mxu1 %v1562_v50  ;;  %1248 = vmatprep.subr.bf16.mxu0 %v1557_v8 }
  0xbb   :  { %1150 = vmatpush3.bf16.msra.mxu1 %v1562_v50  ;;  %1250 = vmatpush3.bf16.msra.mxu0 %v1557_v8 }
  0xbc   :  { %1152 = vmatprep.subr.bf16.mxu1 %v1565_v20  ;;  %1252 = vmatprep.subr.bf16.mxu0 %v1567_v24 }
  0xbf   :  { %1154 = vmatpush3.bf16.msra.mxu1 %v1565_v20  ;;  %1254 = vmatpush3.bf16.msra.mxu0 %v1567_v24 }
  0xc0   :  { %1156 = vmatprep.subr.bf16.mxu1 %v1569_v30  ;;  %1256 = vmatprep.subr.bf16.mxu0 %v1396_v16 }
  0xc2   :  { %1058 = vmatmul.mubr.msk.f32.vlgmr.msra.gmra.mrb[0].mxu0 %vm45_vm5, %v1358_v36 }
  0xc3   :  { %1158 = vmatpush3.bf16.msra.mxu1 %v1569_v30  ;;  %1258 = vmatpush3.bf16.msra.mxu0 %v1396_v16 }
  0xc4   :  { %1092 = vmatprep.mubr.msk.f32.mxu0 %vm44_vm4, %v1358_v36  ;;  %1160 = vmatprep.subr.bf16.mxu1 %v1573_v51 }
  0xc5   :  { %1260 = vmatprep.subr.bf16.mxu0 %v1398_v19 }
  0xc6   :  { %953 = vmatmul.mubr.msk.f32.vlgmr.msra.gmra.mrb[0].mxu1 %vm45_vm5, %v1358_v36 }
  0xc7   :  { %1162 = vmatpush3.bf16.msra.mxu1 %v1573_v51  ;;  %987 = vmatprep.mubr.f32.mxu1 %v148_v63 }
  0xc8   :  { %1262 = vmatpush3.bf16.msra.mxu0 %v1398_v19  ;;  %1164 = vmatprep.subr.bf16.mxu1 %v1577_v56 }
  0xc9   :  { %1264 = vmatprep.subr.bf16.mxu0 %v1408_v23 }
  0xcb   :  { %1166 = vmatpush3.bf16.msra.mxu1 %v1577_v56 }
  0xcc   :  { %1266 = vmatpush3.bf16.msra.mxu0 %v1408_v23  ;;  %1168 = vmatprep.subr.bf16.mxu1 %v1581_v0 }
  0xcd   :  { %1268 = vmatprep.subr.bf16.mxu0 %v1419_v28 }
  0xcf   :  { %1170 = vmatpush3.bf16.msra.mxu1 %v1581_v0 }
  0xd0   :  { %1270 = vmatpush3.bf16.msra.mxu0 %v1419_v28  ;;  %1172 = vmatprep.subr.bf16.mxu1 %v1585_v3 }
  0xd1   :  { %1272 = vmatprep.subr.bf16.mxu0 %v1440_v39 }
  0xd3   :  { %1174 = vmatpush3.bf16.msra.mxu1 %v1585_v3 }
  0xd4   :  { %1274 = vmatpush3.bf16.msra.mxu0 %v1440_v39  ;;  %1176 = vmatprep.subr.bf16.mxu1 %v1589_v49 }
  0xd5   :  { %1276 = vmatprep.subr.bf16.mxu0 %v1471_v55 }
  0xd7   :  { %1178 = vmatpush3.bf16.msra.mxu1 %v1589_v49 }
  0xd8   :  { %1278 = vmatpush3.bf16.msra.mxu0 %v1471_v55  ;;  %1180 = vmatprep.subr.bf16.mxu1 %v1591_v52 }
  0xd9   :  { %1280 = vmatprep.subr.bf16.mxu0 %v1499_v7 }
  0xdb   :  { %1182 = vmatpush3.bf16.msra.mxu1 %v1591_v52 }
  0xdc   :  { %1282 = vmatpush3.bf16.msra.mxu0 %v1499_v7  ;;  %1184 = vmatprep.subr.bf16.mxu1 %v1593_v41 }
  0xdd   :  { %1284 = vmatprep.subr.bf16.mxu0 %v1524_v22 }
  0xdf   :  { %1186 = vmatpush3.bf16.msra.mxu1 %v1593_v41 }
  0xe0   :  { %1286 = vmatpush3.bf16.msra.mxu0 %v1524_v22  ;;  %1188 = vmatprep.subr.bf16.mxu1 %v1595_v42 }
  0xe3   :  { %1093 = vmatmul.mubr.msk.f32.vlgmr.msra.gmra.mrb[0].mxu0 %vm45_vm5, %v1358_v36  ;;  %1190 = vmatpush3.bf16.msra.mxu1 %v1595_v42 }
  0xe6   :  { %988 = vmatmul.mubr.f32.vlgmr.msra.gmra.mrb[0].mxu1 %v1609_v38 }
 0x1b6   :  { %v1094_v16 = vpop.f32.mrb[0].mxu0 }
 0x1b7   :  { %v740_v19 = vpop.f32.mrb[1].mxu0 }
 0x1b9   :  { %v989_v23 = vpop.f32.mrb[0].mxu1 }
 0x1ba   :  { %v1287_v28 = vadd.f32 %v1094_v16, %v989_v23  ;;  %v424_v39 = vpop.f32.mrb[1].mxu1 }
 0x1bb   :  { %v1288_v48 = vadd.f32 %v740_v19, %v424_v39 }
 0x1bc   :  { %751 = vst [vmem:[#allocation5 + $0x8] sm:$0xff] %v1287_v28 }
 0x1bd   :  { %750 = vst [vmem:[#allocation5] sm:$0xff] %v1288_v48 }
 0x1be   :  { %1338 = shalt.err (!%p1335_p12)
}
 0x1bf   :  { %s1339_s30 = scalar_lea.hbm %s1713_s2, 256 }
 0x1c0   :  { %p1340_p13 = scmp.ne.s32.totalorder %s1713_s2, %s1339_s30  ;;  %p1343_p0 = scmp.lt.u32.totalorder %s1339_s30, %s1713_s2 }
 0x1c2   :  { %p1345_p1 = pnand %p1343_p0, %p1340_p13 }
 0x1c4   :  { %1348 = shalt.err (!%p1345_p1)
}
 0x1c5   :  { %763 = dma.vmem_to_hbm [thread:$0]  %s758_s1, 256, %s1713_s2, [#allocation4], %s1354_s19, %s1354_s19, %s1355_s20  }
 0x1c6   :  { %1351 = dma.done.wait [#allocation4], 256  }
 0x1c7   :  { %1352 = vsyncadd [#allocation4], 4294967040 }
 0x1c8   :  { %767 = vsyncpa [#allocation3], 1 }
 0x1c9   :  { %768 = vsyncpa [#allocation4], 1 }

</bundles_post_ra>
